<compile_context>
chip_gen: v7x
topology: tpu7x:2x2x1
jax: 0.10.0
libtpu: 0.0.40
codegen_flags: <defaults>
</compile_context>

<pallas_src>
import jax
import jax.numpy as jnp
from jax.experimental import pallas as pl
from jax.experimental.pallas import tpu as pltpu


# ---------------------------------------------------------------------------
# Kernels
# ---------------------------------------------------------------------------

def scse_fused_kernel(x_ref, w1t_ref, b1_ref, w2t_ref, b2_ref, wsp_ref, o_ref):
    """Single-pass SCSE on a (bb, C, HW) block: channels on sublanes, HW on lanes."""
    x = x_ref[...]                                              # (bb, C, HW), native dtype
    bb, c, hw = x.shape

    # ---- channel squeeze-excitation: avg-pool over HW -> tiny MLP -> sigmoid ----
    pooled = jnp.sum(x, axis=2, dtype=jnp.float32) * (1.0 / hw)          # (bb, C) f32
    h = jnp.dot(pooled, w1t_ref[...], preferred_element_type=jnp.float32) + b1_ref[...]
    h = jnp.maximum(h, 0.0)                                              # ReLU
    chn = jax.nn.sigmoid(
        jnp.dot(h, w2t_ref[...], preferred_element_type=jnp.float32) + b2_ref[...])  # (bb, C)
    chn = chn[:, :, None]                                                # (bb, C, 1)

    # ---- spatial squeeze-excitation: 1x1 conv C->1 as batched (1,C)@(C,HW) ----
    wsp_b = jnp.broadcast_to(wsp_ref[...][None, :, :], (bb, 1, c))       # (bb, 1, C), x.dtype
    spa = jax.nn.sigmoid(
        jnp.einsum('boc,bch->boh', wsp_b, x,
                   preferred_element_type=jnp.float32))                  # (bb, 1, HW)

    # ---- combine: x * (chn + spa) -- gates cast to x.dtype so the only full-size
    #      elementwise work stays in the input precision ----
    o_ref[...] = x * (chn.astype(x.dtype) + spa.astype(x.dtype))


def scse_apply_kernel(x_ref, chn_ref, wsp_ref, o_ref):
    """HW-tiled path: channel gate precomputed in the wrapper (needs full-HW mean)."""
    x = x_ref[0]                                                         # (C, thw)
    spa = jax.nn.sigmoid(
        jnp.dot(wsp_ref[...], x, preferred_element_type=jnp.float32))    # (1, thw)
    o_ref[0] = x * (chn_ref[0] + spa.astype(x.dtype))


# ---------------------------------------------------------------------------
# Budget / tiling helpers
# ---------------------------------------------------------------------------

def _tpu_vmem_capacity_bytes():
    try:
        info = pltpu.get_tpu_info()
        for attr in ("vmem_capacity_bytes", "vmem_size_bytes"):
            cap = getattr(info, attr, None)
            if cap:
                return int(cap)
    except Exception:
        pass
    return 64 << 20                      # conservative: assume v7x-sized VMEM


def _generation_budgets():
    """(fused per-grid-step slab budget, vmem_limit cap) per TPU generation."""
    cap = _tpu_vmem_capacity_bytes()
    if cap >= (96 << 20):                # v5e / v6e: 128 MiB physical VMEM
        return 20 << 20, 100 << 20
    return 9 << 20, 48 << 20             # v7x: 64 MiB per TensorCore


def _vmem_limit(block_bytes, cap):
    # ~2x input + 2x output (double-buffered) + params/intermediates headroom.
    return int(min(cap, max(32 << 20, 4 * block_bytes + (6 << 20))))


def _choose_batch_block(batch, per_batch_bytes, slab_budget, target_bytes=512 << 10):
    """Smallest divisor of `batch` whose block reaches ~target bytes (keeps grid
    steps plentiful for v7x's two TCs); else the largest divisor within budget."""
    divisors = [d for d in range(1, batch + 1)
                if batch % d == 0 and d * per_batch_bytes <= slab_budget]
    if not divisors:
        return 1
    for d in divisors:
        if d * per_batch_bytes >= target_bytes:
            return d
    return divisors[-1]


# ---------------------------------------------------------------------------
# Wrapper
# ---------------------------------------------------------------------------

def scse_block(x_nchw, w1, b1, w2, b2, w_sp, *, slab_budget_bytes=None):
    """SCSE forward. Params in PyTorch orientation:
       w1:  (red, C) = Linear(C, red).weight        b1: (red,)
       w2:  (C, red) = Linear(red, C).weight        b2: (C,)
       w_sp: (1, C)  = Conv2d(C, 1, 1, bias=False).weight[:, :, 0, 0]
    """
    B, C, H, W = x_nchw.shape
    HW = H * W
    red = w1.shape[0]
    itemsize = jnp.dtype(x_nchw.dtype).itemsize

    default_budget, vmem_cap = _generation_budgets()
    slab_budget = default_budget if slab_budget_bytes is None else int(slab_budget_bytes)

    x = x_nchw.reshape(B, C, HW)                      # free contiguous view of NCHW
    wsp_x = w_sp.astype(x.dtype)                      # (1, C), pre-cast once
    per_batch_bytes = C * HW * itemsize

    if per_batch_bytes <= slab_budget:
        # ---- single fused pass: one HBM read + one write per element ----
        w1t = w1.astype(jnp.float32).T                # (C, red)
        w2t = w2.astype(jnp.float32).T                # (red, C)
        b1r = b1.astype(jnp.float32).reshape(1, red)
        b2r = b2.astype(jnp.float32).reshape(1, C)

        bb = _choose_batch_block(B, per_batch_bytes, slab_budget)
        block_bytes = bb * per_batch_bytes

        out = pl.pallas_call(
            scse_fused_kernel,
            out_shape=jax.ShapeDtypeStruct((B, C, HW), x.dtype),
            grid_spec=pltpu.PrefetchScalarGridSpec(
                num_scalar_prefetch=0,
                grid=(B // bb,),
                in_specs=[
                    pl.BlockSpec((bb, C, HW), lambda b: (b, 0, 0)),
                    pl.BlockSpec((C, red),    lambda b: (0, 0)),
                    pl.BlockSpec((1, red),    lambda b: (0, 0)),
                    pl.BlockSpec((red, C),    lambda b: (0, 0)),
                    pl.BlockSpec((1, C),      lambda b: (0, 0)),
                    pl.BlockSpec((1, C),      lambda b: (0, 0)),
                ],
                out_specs=pl.BlockSpec((bb, C, HW), lambda b: (b, 0, 0)),
            ),
            compiler_params=pltpu.CompilerParams(
                dimension_semantics=("parallel",),
                vmem_limit_bytes=_vmem_limit(block_bytes, vmem_cap)),
        )(x, w1t, b1r, w2t, b2r, wsp_x)
    else:
        # ---- large feature map: channel gate (tiny BxC MLP) in plain JAX;
        #      kernel tiles HW with a ragged (cdiv) last tile ----
        pooled = jnp.mean(x, axis=2, dtype=jnp.float32)                 # (B, C)
        h = jnp.maximum(pooled @ w1.astype(jnp.float32).T
                        + b1.astype(jnp.float32)[None, :], 0.0)
        chn = jax.nn.sigmoid(h @ w2.astype(jnp.float32).T
                             + b2.astype(jnp.float32)[None, :])
        chn = chn.astype(x.dtype).reshape(B, C, 1)                      # (B, C, 1)

        tile_budget = min(slab_budget, 4 << 20)
        max_lanes = max(128, tile_budget // (C * itemsize))
        thw = max(128, (max_lanes // 128) * 128)                        # 128-multiple
        thw = min(thw, ((HW + 127) // 128) * 128)                       # no point past HW
        n_hw = pl.cdiv(HW, thw)
        block_bytes = C * thw * itemsize

        out = pl.pallas_call(
            scse_apply_kernel,
            out_shape=jax.ShapeDtypeStruct((B, C, HW), x.dtype),
            grid_spec=pltpu.PrefetchScalarGridSpec(
                num_scalar_prefetch=0,
                grid=(B, n_hw),
                in_specs=[
                    pl.BlockSpec((1, C, thw), lambda b, t: (b, 0, t)),
                    pl.BlockSpec((1, C, 1),   lambda b, t: (b, 0, 0)),
                    pl.BlockSpec((1, C),      lambda b, t: (0, 0)),
                ],
                out_specs=pl.BlockSpec((1, C, thw), lambda b, t: (b, 0, t)),
            ),
            compiler_params=pltpu.CompilerParams(
                dimension_semantics=("parallel", "parallel"),
                vmem_limit_bytes=_vmem_limit(block_bytes, vmem_cap)),
        )(x, chn, wsp_x)

    return out.reshape(B, C, H, W)


# ---------------------------------------------------------------------------
# Pure-JAX reference (matches the PyTorch forward, same param orientation)
# ---------------------------------------------------------------------------

def scse_reference(x_nchw, w1, b1, w2, b2, w_sp):
    pooled = jnp.mean(x_nchw, axis=(2, 3))                              # (B, C)
    h = jnp.maximum(pooled @ w1.T + b1[None, :], 0.0)                   # (B, red)
    chn = jax.nn.sigmoid(h @ w2.T + b2[None, :])                        # (B, C)
    chn_se = x_nchw * chn[:, :, None, None]
    spa = jax.nn.sigmoid(jnp.einsum("bchw,c->bhw", x_nchw, w_sp[0]))
    spa_se = x_nchw * spa[:, None, :, :]
    return chn_se + spa_se


if __name__ == "__main__":
    def make_params(key, C, red):
        k1, kb1, k2, kb2, ks = jax.random.split(key, 5)
        w1 = jax.random.normal(k1, (red, C), jnp.float32) * 0.1    # Linear(C, red).weight
        b1 = jax.random.normal(kb1, (red,), jnp.float32) * 0.1
        w2 = jax.random.normal(k2, (C, red), jnp.float32) * 0.1    # Linear(red, C).weight
        b2 = jax.random.normal(kb2, (C,), jnp.float32) * 0.1
        wsp = jax.random.normal(ks, (1, C), jnp.float32) * 0.1     # Conv2d(C,1,1).weight[:,:,0,0]
        return w1, b1, w2, b2, wsp

    key = jax.random.PRNGKey(0)
    kx1, kp1, kx2, kp2, kx3, kp3, kx4, kp4 = jax.random.split(key, 8)

    # --- case 1: small feature map -> fused single-pass kernel (batch-blocked) ---
    B, C, H, W, reduction = 2, 32, 16, 16, 16
    red = C // reduction
    x1 = jax.random.normal(kx1, (B, C, H, W), jnp.float32)
    p1 = make_params(kp1, C, red)
    out1 = jax.block_until_ready(scse_block(x1, *p1))
    ref1 = scse_reference(x1, *p1)
    assert out1.shape == x1.shape
    assert jnp.allclose(out1, ref1, rtol=1e-4, atol=1e-4), "fused path mismatch vs reference"

    # --- case 2: force the HW-tiled path (channel gate precomputed, lane-dense tiles) ---
    B2, C2, H2, W2, red2 = 2, 32, 32, 32, 4
    x2 = jax.random.normal(kx2, (B2, C2, H2, W2), jnp.float32)
    p2 = make_params(kp2, C2, red2)
    out2 = jax.block_until_ready(scse_block(x2, *p2, slab_budget_bytes=64 * 1024))
    ref2 = scse_reference(x2, *p2)
    assert out2.shape == x2.shape
    assert jnp.allclose(out2, ref2, rtol=1e-4, atol=1e-4), "tiled path mismatch vs reference"

    # --- case 3: ragged HW (HW % 128 != 0) through the cdiv-tiled path ---
    B3, C3, H3, W3, red3 = 2, 16, 20, 20, 4
    x3 = jax.random.normal(kx3, (B3, C3, H3, W3), jnp.float32)
    p3 = make_params(kp3, C3, red3)
    out3 = jax.block_until_ready(scse_block(x3, *p3, slab_budget_bytes=16 * 1024))
    ref3 = scse_reference(x3, *p3)
    assert out3.shape == x3.shape
    assert jnp.allclose(out3, ref3, rtol=1e-4, atol=1e-4), "ragged tiled path mismatch vs reference"

    # --- case 4: ragged HW, odd batch, fused path ---
    B4, C4, H4, W4, red4 = 3, 8, 10, 10, 2
    x4 = jax.random.normal(kx4, (B4, C4, H4, W4), jnp.float32)
    p4 = make_params(kp4, C4, red4)
    out4 = jax.block_until_ready(scse_block(x4, *p4))
    ref4 = scse_reference(x4, *p4)
    assert out4.shape == x4.shape
    assert jnp.allclose(out4, ref4, rtol=1e-4, atol=1e-4), "fused ragged path mismatch vs reference"

    print("KERNEL_OK")
</pallas_src>

<mosaic_0001>
module attributes {stable_mosaic.version = 11 : i64} {
  func.func @scse_fused_kernel(%arg0: i32, %arg1: memref<2x32x256xf32, #tpu.memory_space<vmem>>, %arg2: memref<32x2xf32, #tpu.memory_space<vmem>>, %arg3: memref<1x2xf32, #tpu.memory_space<vmem>>, %arg4: memref<2x32xf32, #tpu.memory_space<vmem>>, %arg5: memref<1x32xf32, #tpu.memory_space<vmem>>, %arg6: memref<1x32xf32, #tpu.memory_space<vmem>>, %arg7: memref<2x32x256xf32, #tpu.memory_space<vmem>>) attributes {dimension_semantics = [#tpu.dimension_semantics<parallel>], iteration_bounds = array<i64: 1>, scalar_prefetch = 0 : i64, scratch_operands = 0 : i64, tpu.core_type = #tpu.core_type<tc>, window_params = [{transform_indices = @transform_0, window_bounds = array<i64: 2, 32, 256>}, {pipeline_mode = #tpu.pipeline_mode<synchronous>, transform_indices = @transform_1, window_bounds = array<i64: 32, 2>}, {pipeline_mode = #tpu.pipeline_mode<synchronous>, transform_indices = @transform_2, window_bounds = array<i64: 1, 2>}, {pipeline_mode = #tpu.pipeline_mode<synchronous>, transform_indices = @transform_3, window_bounds = array<i64: 2, 32>}, {pipeline_mode = #tpu.pipeline_mode<synchronous>, transform_indices = @transform_4, window_bounds = array<i64: 1, 32>}, {pipeline_mode = #tpu.pipeline_mode<synchronous>, transform_indices = @transform_5, window_bounds = array<i64: 1, 32>}, {transform_indices = @transform_6, window_bounds = array<i64: 2, 32, 256>}]} {
    %c0 = arith.constant 0 : index
    %c0_0 = arith.constant 0 : index
    %c0_1 = arith.constant 0 : index
    %0 = vector.load %arg1[%c0, %c0_0, %c0_1] : memref<2x32x256xf32, #tpu.memory_space<vmem>>, vector<2x32x256xf32>
    %cst = arith.constant dense<0.000000e+00> : vector<2x32xf32>
    %1 = vector.multi_reduction <add>, %0, %cst [2] : vector<2x32x256xf32> to vector<2x32xf32>
    %cst_2 = arith.constant 3.906250e-03 : f32
    %2 = vector.broadcast %cst_2 : f32 to vector<2x32xf32>
    %3 = arith.mulf %1, %2 : vector<2x32xf32>
    %c0_3 = arith.constant 0 : index
    %c0_4 = arith.constant 0 : index
    %4 = vector.load %arg2[%c0_3, %c0_4] : memref<32x2xf32, #tpu.memory_space<vmem>>, vector<32x2xf32>
    %cst_5 = arith.constant dense<0.000000e+00> : vector<2x2xf32>
    %5 = tpu.matmul %3, %4, %cst_5 {dimension_numbers = #tpu.dot_dimension_numbers<[1], [0], [0], [1], [0, 0, 1, 1], [], []>} : vector<2x32xf32>, vector<32x2xf32>, vector<2x2xf32> -> vector<2x2xf32>
    %c0_6 = arith.constant 0 : index
    %c0_7 = arith.constant 0 : index
    %6 = vector.load %arg3[%c0_6, %c0_7] : memref<1x2xf32, #tpu.memory_space<vmem>>, vector<1x2xf32>
    %7 = vector.broadcast %6 : vector<1x2xf32> to vector<2x2xf32>
    %8 = arith.addf %5, %7 : vector<2x2xf32>
    %cst_8 = arith.constant 0.000000e+00 : f32
    %9 = vector.broadcast %cst_8 : f32 to vector<2x2xf32>
    %10 = arith.maximumf %8, %9 : vector<2x2xf32>
    %c0_9 = arith.constant 0 : index
    %c0_10 = arith.constant 0 : index
    %11 = vector.load %arg4[%c0_9, %c0_10] : memref<2x32xf32, #tpu.memory_space<vmem>>, vector<2x32xf32>
    %cst_11 = arith.constant dense<0.000000e+00> : vector<2x32xf32>
    %12 = tpu.matmul %10, %11, %cst_11 {dimension_numbers = #tpu.dot_dimension_numbers<[1], [0], [0], [1], [0, 0, 1, 1], [], []>} : vector<2x2xf32>, vector<2x32xf32>, vector<2x32xf32> -> vector<2x32xf32>
    %c0_12 = arith.constant 0 : index
    %c0_13 = arith.constant 0 : index
    %13 = vector.load %arg5[%c0_12, %c0_13] : memref<1x32xf32, #tpu.memory_space<vmem>>, vector<1x32xf32>
    %14 = vector.broadcast %13 : vector<1x32xf32> to vector<2x32xf32>
    %15 = arith.addf %12, %14 : vector<2x32xf32>
    %16 = arith.negf %15 : vector<2x32xf32>
    %17 = math.exp %16 : vector<2x32xf32>
    %cst_14 = arith.constant 1.000000e+00 : f32
    %18 = vector.broadcast %cst_14 : f32 to vector<2x32xf32>
    %19 = arith.addf %18, %17 : vector<2x32xf32>
    %20 = arith.divf %18, %19 : vector<2x32xf32>
    %21 = vector.shape_cast %20 : vector<2x32xf32> to vector<2x32x1xf32>
    %c0_15 = arith.constant 0 : index
    %c0_16 = arith.constant 0 : index
    %22 = vector.load %arg6[%c0_15, %c0_16] : memref<1x32xf32, #tpu.memory_space<vmem>>, vector<1x32xf32>
    %23 = vector.shape_cast %22 : vector<1x32xf32> to vector<1x1x32xf32>
    %24 = vector.shape_cast %23 : vector<1x1x32xf32> to vector<1x1x32xf32>
    %25 = vector.broadcast %24 : vector<1x1x32xf32> to vector<2x1x32xf32>
    "tpu.trace_start"() <{level = 10 : i32, message = "boc,bch->boh"}> : () -> ()
    %cst_17 = arith.constant dense<0.000000e+00> : vector<2x1x256xf32>
    %26 = tpu.matmul %25, %0, %cst_17 {dimension_numbers = #tpu.dot_dimension_numbers<[2], [1], [1], [2], [0, 0, 0, 1, 1, 2], [0], [0]>} : vector<2x1x32xf32>, vector<2x32x256xf32>, vector<2x1x256xf32> -> vector<2x1x256xf32>
    "tpu.trace_stop"() : () -> ()
    %27 = arith.negf %26 : vector<2x1x256xf32>
    %28 = math.exp %27 : vector<2x1x256xf32>
    %cst_18 = arith.constant 1.000000e+00 : f32
    %29 = vector.broadcast %cst_18 : f32 to vector<2x1x256xf32>
    %30 = arith.addf %29, %28 : vector<2x1x256xf32>
    %31 = arith.divf %29, %30 : vector<2x1x256xf32>
    %32 = vector.broadcast %21 : vector<2x32x1xf32> to vector<2x32x256xf32>
    %33 = vector.broadcast %31 : vector<2x1x256xf32> to vector<2x32x256xf32>
    %34 = arith.addf %32, %33 : vector<2x32x256xf32>
    %35 = arith.mulf %0, %34 : vector<2x32x256xf32>
    %c0_19 = arith.constant 0 : index
    %c0_20 = arith.constant 0 : index
    %c0_21 = arith.constant 0 : index
    %36 = vector.load %arg7[%c0_19, %c0_20, %c0_21] : memref<2x32x256xf32, #tpu.memory_space<vmem>>, vector<2x32x256xf32>
    tpu.vector_store %arg7[%c0_19, %c0_20, %c0_21], %35 {strides = array<i32>} : memref<2x32x256xf32, #tpu.memory_space<vmem>>, vector<2x32x256xf32>,
    return
  }
  func.func @transform_0(%arg0: i32) -> (i32, i32, i32) {
    %c0_i32 = arith.constant 0 : i32
    %c0_i32_0 = arith.constant 0 : i32
    %c0_i32_1 = arith.constant 0 : i32
    return %arg0, %c0_i32, %c0_i32_0 : i32, i32, i32
  }
  func.func @transform_1(%arg0: i32) -> (i32, i32) {
    %c0_i32 = arith.constant 0 : i32
    %c0_i32_0 = arith.constant 0 : i32
    %c0_i32_1 = arith.constant 0 : i32
    return %c0_i32, %c0_i32_0 : i32, i32
  }
  func.func @transform_2(%arg0: i32) -> (i32, i32) {
    %c0_i32 = arith.constant 0 : i32
    %c0_i32_0 = arith.constant 0 : i32
    %c0_i32_1 = arith.constant 0 : i32
    return %c0_i32, %c0_i32_0 : i32, i32
  }
  func.func @transform_3(%arg0: i32) -> (i32, i32) {
    %c0_i32 = arith.constant 0 : i32
    %c0_i32_0 = arith.constant 0 : i32
    %c0_i32_1 = arith.constant 0 : i32
    return %c0_i32, %c0_i32_0 : i32, i32
  }
  func.func @transform_4(%arg0: i32) -> (i32, i32) {
    %c0_i32 = arith.constant 0 : i32
    %c0_i32_0 = arith.constant 0 : i32
    %c0_i32_1 = arith.constant 0 : i32
    return %c0_i32, %c0_i32_0 : i32, i32
  }
  func.func @transform_5(%arg0: i32) -> (i32, i32) {
    %c0_i32 = arith.constant 0 : i32
    %c0_i32_0 = arith.constant 0 : i32
    %c0_i32_1 = arith.constant 0 : i32
    return %c0_i32, %c0_i32_0 : i32, i32
  }
  func.func @transform_6(%arg0: i32) -> (i32, i32, i32) {
    %c0_i32 = arith.constant 0 : i32
    %c0_i32_0 = arith.constant 0 : i32
    %c0_i32_1 = arith.constant 0 : i32
    return %arg0, %c0_i32, %c0_i32_0 : i32, i32, i32
  }
}

</mosaic_0001>

<bundles_post_ra>
// kernel: tpu_custom_call.1
= control target key start
LH: loop header
LB: loop body
LE: loop exit
PB: predicated region body
PF: predicated region fallthrough
CT: control target
= control target key end

     0   :  { %11 = vsyncpa [#allocation3], 0  ;;  %s944_s0 = inlined_call_operand.hbm [shape: f32[2,32,256], index: 0, kind: input, shape index: {}]   ;;  %s945_s1 = inlined_call_operand.vmem [shape: f32[32,2], index: 1, kind: input, shape index: {}]   ;;  %s946_s2 = inlined_call_operand.vmem [shape: f32[1,2], index: 2, kind: input, shape index: {}]   ;;  %s947_s3 = inlined_call_operand.vmem [shape: f32[2,32], index: 3, kind: input, shape index: {}]   ;;  %s948_s4 = inlined_call_operand.vmem [shape: f32[1,32], index: 4, kind: input, shape index: {}]   ;;  %s949_s5 = inlined_call_operand.vmem [shape: f32[1,32], index: 5, kind: input, shape index: {}]   ;;  %s950_s6 = inlined_call_operand.hbm [shape: f32[2,32,256], index: 6, kind: output, shape index: {}]  }
   0x1   :  { %12 = vsyncpa [#allocation4], 0  ;;  %s740_s21 = smov [#allocation2]   ;;  %s692_s25 = scalar_lea.hbm %s944_s0, 2048 }
   0x2   :  { %s18_s22 = sshll.u32 %s740_s21, 4  ;;  %p693_p0 = scmp.ne.s32.totalorder %s944_s0, %s692_s25  ;;  %s19_s22 = int_to_ptr.vmem [resolvable:$true] %s18_s22 }
   0x3   :  { %p696_p1 = scmp.lt.u32.totalorder %s692_s25, %s944_s0 }
   0x5   :  { %p698_p2 = pnand %p696_p1, %p693_p0 }
   0x7   :  { %701 = shalt.err (!%p698_p2)
}
   0x8   :  { %s702_s30 = scalar_lea.vmem %s19_s22, 2048  ;;  %p707_p4 = scmp.lt.s32.totalorder %s19_s22, %s19_s22 }
   0x9   :  { %p703_p3 = scmp.ne.s32.totalorder %s19_s22, %s702_s30  ;;  %p708_p5 = scmp.lt.s32.totalorder %s702_s30, %s702_s30 }
   0xb   :  { %p709_p6 = por %p708_p5, %p707_p4 }
   0xd   :  { %p710_p7 = pnand %p709_p6, %p703_p3 }
   0xf   :  { %713 = shalt.err (!%p710_p7)
}
  0x10   :  { %s741_s7 = smov 256   ;;  %s742_s8 = smov 16  }
  0x11   :  { %24 = dma.hbm_to_vmem [thread:$0]  %s944_s0, 2048, %s19_s22, [#allocation3], %s741_s7, %s741_s7, %s742_s8  }
  0x12   :  { %736 = dma.done.wait [#allocation3], 2048  }
  0x13   :  { %737 = vsyncadd [#allocation3], 4294965248  ;;  %v797_v0 = vld [vmem:[#allocation2 + $0x40] sm:$0xff]  ;;  %v799_v1 = vld [vmem:[#allocation2 + $0x48] sm:$0xff]  ;;  %v743_v27 = vmov 0.0|0.0   ;;  %vm744_vm0 = vmmov 0   ;;  %v105_v32 = vlaneseq }
  0x14   :  { %v801_v2 = vld [vmem:[#allocation2] sm:$0xff]  ;;  %v66_v3 = vadd.f32 %v799_v1, %v797_v0  ;;  %v805_v4 = vld [vmem:[#allocation2 + $0x8] sm:$0xff]  ;;  %v807_v5 = vld [vmem:[#allocation2 + $0x50] sm:$0xff]  ;;  %643 = vmatprep.subr.bf16.mxu0 %v743_v27  ;;  %v745_v31 = vmov 0.0   ;;  %vm116_vm1 = vcmask 130112   ;;  %vm123_vm2 = vcmask 195712  }
  0x15   :  { %v809_v6 = vld [vmem:[#allocation2 + $0x58] sm:$0xff]  ;;  %v54_v7 = vadd.f32 %v805_v4, %v801_v2  ;;  %v813_v8 = vld [vmem:[#allocation2 + $0x10] sm:$0xff]  ;;  %v821_v12 = vld [vmem:[#allocation2 + $0x60] sm:$0xff]  ;;  %635 = vmatprep.mubr.msk.f32.mxu0 %vm744_vm0, %v745_v31  ;;  %638 = vmatprep.subr.mxu1 %v745_v31  ;;  %v106_v34 = vand.u32 127, %v105_v32  ;;  %v860_v39 = vshrl.u32 %v105_v32, 7  ;;  %vm130_vm3 = vcmask 261312  }
  0x16   :  { %v815_v9 = vld [vmem:[#allocation2 + $0x18] sm:$0xff]  ;;  %67 = vadd.xlane.f32.xlu1 %v66_v3  ;;  %v69_v10 = vadd.f32 %v809_v6, %v807_v5  ;;  %v823_v13 = vld [vmem:[#allocation2 + $0x68] sm:$0xff]  ;;  %v825_v14 = vld [vmem:[#allocation2 + $0x20] sm:$0xff]  ;;  %640 = vmatprep.mubr.msk.f32.mxu1 %vm744_vm0, %v745_v31  ;;  %vm151_vm4 = vcmask 1041409   ;;  %vm153_vm5 = vcmask 261120   ;;  %vm239_vm6 = vcmask 1041408  }
  0x17   :  { %55 = vadd.xlane.f32.xlu0 %v54_v7  ;;  %v57_v11 = vadd.f32 %v815_v9, %v813_v8  ;;  %v827_v15 = vld [vmem:[#allocation2 + $0x28] sm:$0xff]  ;;  %v72_v16 = vadd.f32 %v823_v13, %v821_v12  ;;  %v833_v18 = vld [vmem:[#allocation2 + $0x70] sm:$0xff]  ;;  %v835_v19 = vld [vmem:[#allocation2 + $0x78] sm:$0xff]  ;;  %v111_v36 = vadd.s32 4294967288, %v106_v34  ;;  %v118_v38 = vadd.s32 4294967280, %v106_v34 }
  0x18   :  { %v60_v17 = vadd.f32 %v827_v15, %v825_v14  ;;  %v837_v20 = vld [vmem:[#allocation2 + $0x30] sm:$0xff]  ;;  %v839_v21 = vld [vmem:[#allocation2 + $0x38] sm:$0xff]  ;;  %v75_v22 = vadd.f32 %v835_v19, %v833_v18  ;;  %v86_v24 = vld [vmem:[%s945_s1] sm:$0xff]  ;;  %v125_v43 = vadd.s32 4294967272, %v106_v34  ;;  %v109_v47 = vsub.s32 %v106_v34, %v860_v39 }
  0x19   :  { %v63_v23 = vadd.f32 %v839_v21, %v837_v20  ;;  %v87_v25 = vld [vmem:[%s945_s1 + $0x8] sm:$0xff]  ;;  %v88_v28 = vld [vmem:[%s945_s1 + $0x10] sm:$0xff]  ;;  %v89_v29 = vld [vmem:[%s945_s1 + $0x18] sm:$0xff]  ;;  %v114_v41 = vsub.s32 %v111_v36, %v860_v39  ;;  %v121_v45 = vsub.s32 %v118_v38, %v860_v39  ;;  %vm235_vm7 = vcmask 15360  }
  0x1a   :  { %70 = vadd.xlane.f32.xlu1 %v69_v10  ;;  %v644_v26 = vpack.c.bf16 %v87_v25, %v86_v24  ;;  %v647_v30 = vpack.c.bf16 %v89_v29, %v88_v28  ;;  %v128_v54 = vsub.s32 %v125_v43, %v860_v39  ;;  %v227_v25 = vld [vmem:[%s947_s3] sm:$0x3]  ;;  %v657_v28 = vpack.c.bf16 %v809_v6, %v799_v1 }
  0x1b   :  { %58 = vadd.xlane.f32.xlu0 %v57_v11  ;;  %639 = vmatpush3.msk.msra.mxu1 %vm239_vm6, %v227_v25  ;;  %v663_v29 = vpack.c.bf16 %v833_v18, %v821_v12  ;;  %v357_v32 = vld [vmem:[%s949_s5] sm:$0x1] }
  0x1c   :  { %645 = vmatpush3.bf16.msra.mxu0 %v644_v26  ;;  %v649_v26 = vpack.c.bf16 %v815_v9, %v805_v4 }
  0x1d   :  { %646 = vmatprep.subr.bf16.mxu0 %v743_v27  ;;  %v659_v27 = vpack.c.bf16 %v807_v5, %v797_v0 }
  0x1e   :  { %73 = vadd.xlane.f32.xlu1 %v72_v16  ;;  %650 = vmatprep.subr.bf16.mxu1 %v649_v26 }
  0x1f   :  { %61 = vadd.xlane.f32.xlu0 %v60_v17 }
  0x20   :  { %648 = vmatpush3.bf16.msra.mxu0 %v647_v30  ;;  %v661_v30 = vpack.c.bf16 %v835_v19, %v823_v13 }
  0x21   :  { %658 = vmatprep.subr.bf16.mxu0 %v657_v28 }
  0x22   :  { %76 = vadd.xlane.f32.xlu1 %v75_v22 }
  0x23   :  { %64 = vadd.xlane.f32.xlu0 %v63_v23 }
  0xa3   :  { %v68_v33 = vpop.xlane.xlu1 %67 }
  0xa4   :  { %v56_v35 = vpop.xlane.xlu0 %55  ;;  %v82_v48 = vmul.f32 0.00390625, %v68_v33  ;;  %v608_v33 = vld [vmem:[%s946_s2] ss:$0 sm:$0xff] }
  0xa5   :  { %v78_v51 = vmul.f32 0.00390625, %v56_v35 }
  0xa6   :  { %v135_v58 = vrot.slane %v82_v48, %v109_v47 }
  0xa7   :  { %v71_v37 = vpop.xlane.xlu1 %70  ;;  %v110_v62 = vrot.slane %v78_v51, %v109_v47 }
  0xa8   :  { %v59_v40 = vpop.xlane.xlu0 %58  ;;  %v83_v42 = vmul.f32 0.00390625, %v71_v37  ;;  %v651_v37 = vpack.c.bf16 %v813_v8, %v801_v2 }
  0xa9   :  { %v79_v44 = vmul.f32 0.00390625, %v59_v40  ;;  %v653_v40 = vpack.c.bf16 %v839_v21, %v827_v15 }
  0xaa   :  { %v139_v53 = vrot.slane %v83_v42, %v114_v41 }
  0xab   :  { %v74_v46 = vpop.xlane.xlu1 %73  ;;  %v115_v55 = vrot.slane %v79_v44, %v114_v41  ;;  %v655_v41 = vpack.c.bf16 %v837_v20, %v825_v14 }
  0xac   :  { %v84_v49 = vmul.f32 0.00390625, %v74_v46  ;;  %v62_v50 = vpop.xlane.xlu0 %61  ;;  %v140_v3 = vsel %vm116_vm1, %v139_v53, %v135_v58  ;;  %v610_v46 = vld [vmem:[%s948_s4] ss:$0 sm:$0xff]  ;;  %s746_s4 = smov [#allocation5]  }
  0xad   :  { %v80_v52 = vmul.f32 0.00390625, %v62_v50  ;;  %v117_v10 = vsel %vm116_vm1, %v115_v55, %v110_v62  ;;  %v321_v62 = vsub.s32 0, %v860_v39  ;;  %s596_s22 = sshll.u32 %s746_s4, 4  ;;  %s597_s22 = int_to_ptr.vmem [resolvable:$true] %s596_s22 }
  0xae   :  { %v144_v56 = vrot.slane %v84_v49, %v121_v45  ;;  %s714_s23 = scalar_lea.vmem %s597_s22, 2048  ;;  %p719_p9 = scmp.lt.s32.totalorder %s597_s22, %s597_s22 }
  0xaf   :  { %v77_v57 = vpop.xlane.xlu1 %76  ;;  %v122_v59 = vrot.slane %v80_v52, %v121_v45  ;;  %p715_p8 = scmp.ne.s32.totalorder %s597_s22, %s714_s23  ;;  %p720_p10 = scmp.lt.s32.totalorder %s714_s23, %s714_s23 }
  0xb0   :  { %v85_v60 = vmul.f32 0.00390625, %v77_v57  ;;  %v65_v61 = vpop.xlane.xlu0 %64  ;;  %v145_v11 = vsel %vm123_vm2, %v144_v56, %v140_v3 }
  0xb1   :  { %v81_v63 = vmul.f32 0.00390625, %v65_v61  ;;  %v124_v17 = vsel %vm123_vm2, %v122_v59, %v117_v10  ;;  %p721_p11 = por %p720_p10, %p719_p9 }
  0xb2   :  { %v149_v7 = vrot.slane %v85_v60, %v128_v54 }
  0xb3   :  { %v129_v16 = vrot.slane %v81_v63, %v128_v54  ;;  %p722_p12 = pnand %p721_p11, %p715_p8 }
  0xb4   :  { %v150_v22 = vsel %vm130_vm3, %v149_v7, %v145_v11 }
  0xb5   :  { %v131_v23 = vsel %vm130_vm3, %v129_v16, %v124_v17 }
  0xb6   :  { %v152_v24 = vsel %vm151_vm4, %v150_v22, %v131_v23  ;;  %v340_v23 = vsub.s32 1, %v860_v39 }
  0xb7   :  { %636 = vmatmul.mubr.msk.f32.vlgmr.msra.gmra.mrb[0].mxu0 %vm153_vm5, %v152_v24 }
  0xb8   :  { %496 = vmatprep.mubr.f32.mxu0 %v745_v31  ;;  %660 = vmatpush1.bf16.msra.mxu0 %v659_v27 }
  0xb9   :  { %662 = vmatprep.subr.bf16.mxu0 %v661_v30 }
  0xbc   :  { %664 = vmatpush1.bf16.msra.mxu0 %v663_v29 }
  0xbf   :  { %615 = vmatmul.mubr.msk.f32.vlgmr.msra.gmra.mrb[2].mxu0 %vm153_vm5, %v357_v32 }
 0x18a   :  { %v222_v34 = vpop.f32.mrb[0].mxu0 }
 0x18b   :  { %v223_v35 = vadd.f32 %v608_v33, %v222_v34  ;;  %v637_v36 = vpop.f32.mrb[1].mxu0 }
 0x18d   :  { %v226_v38 = vmax.f32 %v223_v35, 0.0 }
 0x18f   :  { %641 = vmatmul.mubr.msk.f32.vlgmr.msra.gmra.mrb[0].mxu1 %vm235_vm7, %v226_v38 }
 0x190   :  { %652 = vmatpush1.bf16.msra.mxu1 %v651_v37  ;;  %425 = vmatprep.mubr.f32.mxu1 %v745_v31 }
 0x191   :  { %654 = vmatprep.subr.bf16.mxu1 %v653_v40 }
 0x192   :  { %v498_v42 = vpop.f32.mrb[2].mxu0 }
 0x193   :  { %v500_v43 = vpop.f32.mrb[3].mxu0  ;;  %v618_v44 = vmul.f32 -1.442695, %v498_v42 }
 0x194   :  { %656 = vmatpush1.bf16.msra.mxu1 %v655_v41  ;;  %v619_v45 = vmul.f32 -1.442695, %v500_v43 }
 0x195   :  { %672 = vpow2.f32 %v618_v44 }
 0x196   :  { %674 = vpow2.f32 %v619_v45 }
 0x197   :  { %614 = vmatmul.mubr.msk.f32.vlgmr.msra.gmra.mrb[2].mxu1 %vm153_vm5, %v357_v32 }
 0x19f   :  { %v673_v47 = vpop.eup %672 }
 0x1a0   :  { %v675_v48 = vpop.eup %674  ;;  %v517_v31 = vadd.f32 1.0, %v673_v47 }
 0x1a1   :  { %v518_v53 = vadd.f32 1.0, %v675_v48 }
 0x262   :  { %v309_v49 = vpop.f32.mrb[0].mxu1 }
 0x263   :  { %v310_v50 = vadd.f32 %v610_v46, %v309_v49  ;;  %v642_v51 = vpop.f32.mrb[1].mxu1 }
 0x265   :  { %v613_v52 = vmul.f32 -1.442695, %v310_v50 }
 0x267   :  { %676 = vpow2.f32 %v613_v52 }
 0x268   :  { %678 = vrcp.f32 %v517_v31 }
 0x269   :  { %680 = vrcp.f32 %v518_v53 }
 0x26a   :  { %v427_v54 = vpop.f32.mrb[2].mxu1 }
 0x26b   :  { %v616_v55 = vmul.f32 -1.442695, %v427_v54  ;;  %v429_v56 = vpop.f32.mrb[3].mxu1 }
 0x26c   :  { %v617_v57 = vmul.f32 -1.442695, %v429_v56 }
 0x26d   :  { %682 = vpow2.f32 %v616_v55 }
 0x26e   :  { %684 = vpow2.f32 %v617_v57 }
 0x271   :  { %v677_v58 = vpop.eup %676 }
 0x272   :  { %v679_v59 = vpop.eup %678  ;;  %v316_v60 = vadd.f32 1.0, %v677_v58 }
 0x273   :  { %v681_v61 = vpop.eup %680  ;;  %v900_v63 = vrot.slane %v679_v59, %v321_v62 }
 0x274   :  { %686 = vrcp.f32 %v316_v60  ;;  %v902_v3 = vrot.slane %v681_v61, %v321_v62 }
 0x277   :  { %v683_v7 = vpop.eup %682 }
 0x278   :  { %v685_v10 = vpop.eup %684  ;;  %v515_v11 = vadd.f32 1.0, %v683_v7 }
 0x279   :  { %v516_v16 = vadd.f32 1.0, %v685_v10 }
 0x27a   :  { %688 = vrcp.f32 %v515_v11 }
 0x27b   :  { %690 = vrcp.f32 %v516_v16 }
 0x27e   :  { %v687_v17 = vpop.eup %686 }
 0x27f   :  { %v322_v22 = vrot.slane %v687_v17, %v321_v62  ;;  %v341_v24 = vrot.slane %v687_v17, %v340_v23 }
 0x281   :  { %328 = vbcast.lane.b32.xlu1 %v322_v22, 264  ;;  %324 = vbcast.lane.b32.xlu0 %v322_v22, 256 }
 0x284   :  { %v689_v25 = vpop.eup %688 }
 0x285   :  { %v691_v26 = vpop.eup %690  ;;  %332 = vbcast.lane.b32.xlu1 %v322_v22, 272  ;;  %343 = vbcast.lane.b32.xlu0 %v341_v24, 256  ;;  %v530_v27 = vrot.slane %v689_v25, %v321_v62 }
 0x286   :  { %v534_v28 = vrot.slane %v691_v26, %v321_v62 }
 0x289   :  { %336 = vbcast.lane.b32.xlu1 %v322_v22, 280  ;;  %351 = vbcast.lane.b32.xlu0 %v341_v24, 272 }
 0x28d   :  { %347 = vbcast.lane.b32.xlu1 %v341_v24, 264 }
 0x291   :  { %355 = vbcast.lane.b32.xlu1 %v341_v24, 280 }
 0x2f3   :  { %v329_v29 = vpop.permute.xlu1 %328  ;;  %v325_v30 = vpop.permute.xlu0 %324 }
 0x2f4   :  { %v545_v32 = vadd.f32 %v530_v27, %v329_v29  ;;  %v546_v33 = vadd.f32 %v534_v28, %v329_v29  ;;  %v543_v34 = vadd.f32 %v530_v27, %v325_v30  ;;  %v544_v35 = vadd.f32 %v534_v28, %v325_v30 }
 0x2f6   :  { %v561_v39 = vmul.f32 %v545_v32, %v813_v8  ;;  %v562_v36 = vmul.f32 %v546_v33, %v815_v9  ;;  %v559_v37 = vmul.f32 %v543_v34, %v801_v2  ;;  %v560_v38 = vmul.f32 %v544_v35, %v805_v4 }
 0x2f7   :  { %v333_v40 = vpop.permute.xlu1 %332  ;;  %v344_v41 = vpop.permute.xlu0 %343 }
 0x2f8   :  { %577 = vst [vmem:[#allocation5 + $0x10] sm:$0xff] %v561_v39  ;;  %578 = vst [vmem:[#allocation5 + $0x18] sm:$0xff] %v562_v36  ;;  %v547_v42 = vadd.f32 %v530_v27, %v333_v40  ;;  %v548_v43 = vadd.f32 %v534_v28, %v333_v40  ;;  %v551_v44 = vadd.f32 %v900_v63, %v344_v41 }
 0x2f9   :  { %575 = vst [vmem:[#allocation5] sm:$0xff] %v559_v37  ;;  %576 = vst [vmem:[#allocation5 + $0x8] sm:$0xff] %v560_v38  ;;  %v552_v45 = vadd.f32 %v902_v3, %v344_v41 }
 0x2fa   :  { %v563_v8 = vmul.f32 %v547_v42, %v825_v14  ;;  %v564_v9 = vmul.f32 %v548_v43, %v827_v15  ;;  %v567_v2 = vmul.f32 %v551_v44, %v797_v0 }
 0x2fb   :  { %v568_v4 = vmul.f32 %v552_v45, %v799_v1  ;;  %v337_v46 = vpop.permute.xlu1 %336  ;;  %v352_v47 = vpop.permute.xlu0 %351 }
 0x2fc   :  { %579 = vst [vmem:[#allocation5 + $0x20] sm:$0xff] %v563_v8  ;;  %580 = vst [vmem:[#allocation5 + $0x28] sm:$0xff] %v564_v9  ;;  %v549_v48 = vadd.f32 %v530_v27, %v337_v46  ;;  %v550_v49 = vadd.f32 %v534_v28, %v337_v46  ;;  %v555_v50 = vadd.f32 %v900_v63, %v352_v47 }
 0x2fd   :  { %583 = vst [vmem:[#allocation5 + $0x40] sm:$0xff] %v567_v2  ;;  %584 = vst [vmem:[#allocation5 + $0x48] sm:$0xff] %v568_v4  ;;  %v556_v51 = vadd.f32 %v902_v3, %v352_v47 }
 0x2fe   :  { %v565_v14 = vmul.f32 %v549_v48, %v837_v20  ;;  %v566_v15 = vmul.f32 %v550_v49, %v839_v21  ;;  %v571_v0 = vmul.f32 %v555_v50, %v821_v12 }
 0x2ff   :  { %v572_v1 = vmul.f32 %v556_v51, %v823_v13  ;;  %v348_v31 = vpop.permute.xlu1 %347 }
 0x300   :  { %581 = vst [vmem:[#allocation5 + $0x30] sm:$0xff] %v565_v14  ;;  %582 = vst [vmem:[#allocation5 + $0x38] sm:$0xff] %v566_v15  ;;  %v553_v52 = vadd.f32 %v900_v63, %v348_v31  ;;  %v554_v53 = vadd.f32 %v902_v3, %v348_v31 }
 0x301   :  { %587 = vst [vmem:[#allocation5 + $0x60] sm:$0xff] %v571_v0  ;;  %588 = vst [vmem:[#allocation5 + $0x68] sm:$0xff] %v572_v1 }
 0x302   :  { %v569_v54 = vmul.f32 %v553_v52, %v807_v5  ;;  %v570_v55 = vmul.f32 %v554_v53, %v809_v6 }
 0x303   :  { %v356_v20 = vpop.permute.xlu1 %355 }
 0x304   :  { %585 = vst [vmem:[#allocation5 + $0x50] sm:$0xff] %v569_v54  ;;  %586 = vst [vmem:[#allocation5 + $0x58] sm:$0xff] %v570_v55  ;;  %v557_v12 = vadd.f32 %v900_v63, %v356_v20  ;;  %v558_v13 = vadd.f32 %v902_v3, %v356_v20 }
 0x306   :  { %v573_v21 = vmul.f32 %v557_v12, %v833_v18  ;;  %v574_v56 = vmul.f32 %v558_v13, %v835_v19 }
 0x308   :  { %589 = vst [vmem:[#allocation5 + $0x70] sm:$0xff] %v573_v21  ;;  %590 = vst [vmem:[#allocation5 + $0x78] sm:$0xff] %v574_v56 }
 0x309   :  { %725 = shalt.err (!%p722_p12)
}
 0x30a   :  { %s726_s26 = scalar_lea.hbm %s950_s6, 2048 }
 0x30b   :  { %p727_p13 = scmp.ne.s32.totalorder %s950_s6, %s726_s26  ;;  %p730_p0 = scmp.lt.u32.totalorder %s726_s26, %s950_s6 }
 0x30d   :  { %p732_p1 = pnand %p730_p0, %p727_p13 }
 0x30f   :  { %735 = shalt.err (!%p732_p1)
}
 0x310   :  { %602 = dma.vmem_to_hbm [thread:$0]  %s597_s22, 2048, %s950_s6, [#allocation4], %s741_s7, %s741_s7, %s742_s8  }
 0x311   :  { %738 = dma.done.wait [#allocation4], 2048  }
 0x312   :  { %739 = vsyncadd [#allocation4], 4294965248 }
 0x313   :  { %606 = vsyncpa [#allocation3], 1 }
 0x314   :  { %607 = vsyncpa [#allocation4], 1 }

</bundles_post_ra>
